<compile_context>
chip_gen: v5e
topology: v5e:2x2
jax: 0.10.0
libtpu: 0.0.40
codegen_flags: <defaults>
</compile_context>

<pallas_src>
import functools
import math

import jax
import jax.numpy as jnp
from jax.experimental import pallas as pl
from jax.experimental.pallas import tpu as pltpu


# ----------------------------- tiling helpers ------------------------------
_TM_CAP = 512   # row (sublane) tile cap
_TN_CAP = 512   # output lane tile cap
_TK_CAP = 512   # contraction tile cap


def _round_up(x, m):
    return ((x + m - 1) // m) * m


def _row_tile_and_pad(m, cap=_TM_CAP):
    """Return (tile, padded_dim): tile divides padded_dim, tile <= cap."""
    if m <= cap:
        mp = _round_up(m, 8)
        return mp, mp
    t = (cap // 8) * 8
    while t >= 8:                      # prefer an exact divisor (no padding)
        if m % t == 0:
            return t, m
        t -= 8
    t = (cap // 8) * 8                 # no divisor: pad up to a tile multiple
    return t, _round_up(m, t)


def _lane_tile_and_pad(d, cap):
    """Return (tile, padded_dim) for a lane/contraction dim.

    Prefers multiples of 256 (v6e/v7x 256x256 MXU), then 128; if no divisor
    <= cap exists, pads the dimension instead of returning a full-dim block.
    """
    if d <= cap:
        return d, d
    for q in (256, 128):
        t = (cap // q) * q
        while t >= q:
            if d % t == 0:
                return t, d
            t -= q
    t = (cap // 256) * 256
    return t, _round_up(d, t)


def _pad2(a, rows, cols):
    pr, pc = rows - a.shape[0], cols - a.shape[1]
    if pr or pc:
        a = jnp.pad(a, ((0, pr), (0, pc)))
    return a


def _mosaic(dims, working_bytes):
    """CompilerParams with an explicit VMEM limit derived from the working set."""
    limit = max(32 << 20, min(2 * int(working_bytes), 100 << 20))
    return pltpu.CompilerParams(dimension_semantics=dims,
                                vmem_limit_bytes=limit)


# ----------------------------- Pallas kernels ------------------------------

def _linear_kernel(x_ref, w_ref, b_ref, o_ref, acc_ref, *, activation):
    """One (i, j, k) grid step of Y = act(X @ W + b) with f32 accumulation.

    The accumulator is initialised with the broadcast bias at k == 0, so the
    epilogue is only the (optional) activation + store.
    """
    @pl.when(pl.program_id(2) == 0)
    def _():
        acc_ref[...] = jnp.broadcast_to(b_ref[...].astype(jnp.float32),
                                        acc_ref.shape)

    # Inputs are stored as bf16 (no casts needed): full-rate MXU, half the
    # HBM/VMEM traffic of f32 storage.
    acc_ref[...] += jnp.dot(x_ref[...], w_ref[...],
                            preferred_element_type=jnp.float32)

    @pl.when(pl.program_id(2) == pl.num_programs(2) - 1)
    def _():
        y = acc_ref[...]
        if activation == "relu":
            y = jnp.maximum(y, 0.0)
        elif activation == "gelu":
            # TODO(synk): HF RoBERTa uses erf-GELU; tanh approx keeps the op on
            # the EUP slot with a small numeric divergence.
            y = jax.nn.gelu(y, approximate=True)
        o_ref[...] = y.astype(o_ref.dtype)


def linear(x, w, b, activation="none", out_dtype=None):
    """x:[M,K] @ w:[K,N] + b:[N], tiled (M,N,K) grid with an f32 accumulator."""
    M, K = x.shape
    N = w.shape[1]
    out_dtype = out_dtype or x.dtype

    tm, Mp = _row_tile_and_pad(M)
    tk, Kp = _lane_tile_and_pad(K, _TK_CAP)
    tn, Np = _lane_tile_and_pad(N, _TN_CAP)

    if (Mp, Kp) != (M, K):
        x = _pad2(x, Mp, Kp)
    if (Kp, Np) != (K, N):
        w = _pad2(w, Kp, Np)
    if Np != N:
        b = jnp.pad(b, (0, Np - N))

    xb, wb = x.dtype.itemsize, w.dtype.itemsize
    ob = jnp.dtype(out_dtype).itemsize
    working = 2 * (tm * tk * xb + tk * tn * wb + tn * 4 + tm * tn * ob) \
        + tm * tn * 4

    grid = (Mp // tm, Np // tn, Kp // tk)
    out = pl.pallas_call(
        functools.partial(_linear_kernel, activation=activation),
        out_shape=jax.ShapeDtypeStruct((Mp, Np), out_dtype),
        grid_spec=pltpu.PrefetchScalarGridSpec(
            num_scalar_prefetch=0,
            grid=grid,
            in_specs=[
                pl.BlockSpec((tm, tk), lambda i, j, k: (i, k)),
                pl.BlockSpec((tk, tn), lambda i, j, k: (k, j)),
                pl.BlockSpec((1, tn), lambda i, j, k: (0, j)),
            ],
            out_specs=pl.BlockSpec((tm, tn), lambda i, j, k: (i, j)),
            scratch_shapes=[pltpu.VMEM((tm, tn), jnp.float32)],
        ),
        compiler_params=_mosaic(("parallel", "parallel", "arbitrary"), working),
    )(x, w, b.reshape(1, Np))
    if (Mp, Np) != (M, N):
        out = out[:M, :N]
    return out


def _linear_res_ln_kernel(x_ref, w_ref, b_ref, r_ref, g_ref, bln_ref,
                          o_ref, acc_ref, *, eps):
    """One (i, k) grid step of LayerNorm(X @ W + b + residual); N kept whole."""
    @pl.when(pl.program_id(1) == 0)
    def _():
        # Accumulator starts at residual + bias (both blocks are k-resident).
        acc_ref[...] = (r_ref[...].astype(jnp.float32)
                        + b_ref[...].astype(jnp.float32))

    acc_ref[...] += jnp.dot(x_ref[...], w_ref[...],
                            preferred_element_type=jnp.float32)

    @pl.when(pl.program_id(1) == pl.num_programs(1) - 1)
    def _():
        y = acc_ref[...]
        mean = jnp.mean(y, axis=-1, keepdims=True)
        var = jnp.mean(jnp.square(y - mean), axis=-1, keepdims=True)
        yn = (y - mean) * jax.lax.rsqrt(var + eps)
        o_ref[...] = (yn * g_ref[...] + bln_ref[...]).astype(o_ref.dtype)


def linear_residual_layernorm(x, w, b, residual, gamma, beta, eps=1e-5):
    """Fused LayerNorm(x @ w + b + residual). x:[M,K], w:[K,N], residual:[M,N].

    N is not tiled (LayerNorm needs the full row); M and K are tiled.  Saves
    two HBM round trips per call versus separate matmul + add + LN kernels.
    """
    M, K = x.shape
    N = w.shape[1]
    out_dtype = residual.dtype

    tm, Mp = _row_tile_and_pad(M, 256)
    tk, Kp = _lane_tile_and_pad(K, _TK_CAP)

    if (Mp, Kp) != (M, K):
        x = _pad2(x, Mp, Kp)
    if Kp != K:
        w = _pad2(w, Kp, N)
    if Mp != M:
        residual = _pad2(residual, Mp, N)

    xb, wb, rb = x.dtype.itemsize, w.dtype.itemsize, residual.dtype.itemsize
    ob = jnp.dtype(out_dtype).itemsize
    working = 2 * (tm * tk * xb + tk * N * wb + N * 4 + tm * N * rb
                   + 2 * N * 4 + tm * N * ob) + tm * N * 4

    grid = (Mp // tm, Kp // tk)
    out = pl.pallas_call(
        functools.partial(_linear_res_ln_kernel, eps=eps),
        out_shape=jax.ShapeDtypeStruct((Mp, N), out_dtype),
        grid_spec=pltpu.PrefetchScalarGridSpec(
            num_scalar_prefetch=0,
            grid=grid,
            in_specs=[
                pl.BlockSpec((tm, tk), lambda i, k: (i, k)),
                pl.BlockSpec((tk, N), lambda i, k: (k, 0)),
                pl.BlockSpec((1, N), lambda i, k: (0, 0)),
                pl.BlockSpec((tm, N), lambda i, k: (i, 0)),
                pl.BlockSpec((1, N), lambda i, k: (0, 0)),
                pl.BlockSpec((1, N), lambda i, k: (0, 0)),
            ],
            out_specs=pl.BlockSpec((tm, N), lambda i, k: (i, 0)),
            scratch_shapes=[pltpu.VMEM((tm, N), jnp.float32)],
        ),
        compiler_params=_mosaic(("parallel", "arbitrary"), working),
    )(x, w, b.reshape(1, N), residual, gamma.reshape(1, N), beta.reshape(1, N))
    if Mp != M:
        out = out[:M]
    return out


def _ln_kernel(x_ref, g_ref, b_ref, o_ref, *, eps):
    x = x_ref[...].astype(jnp.float32)
    mean = jnp.mean(x, axis=-1, keepdims=True)
    var = jnp.mean(jnp.square(x - mean), axis=-1, keepdims=True)
    y = (x - mean) * jax.lax.rsqrt(var + eps)
    o_ref[...] = (y * g_ref[...] + b_ref[...]).astype(o_ref.dtype)


def layernorm(x, gamma, beta, eps=1e-5):
    """Row-tiled LayerNorm over the last axis (no residual). x:[M,H]."""
    M, H = x.shape
    tm, Mp = _row_tile_and_pad(M)
    if Mp != M:
        x = _pad2(x, Mp, H)
    xb, ob = x.dtype.itemsize, x.dtype.itemsize
    working = 2 * (tm * H * xb + 2 * H * 4 + tm * H * ob)
    out = pl.pallas_call(
        functools.partial(_ln_kernel, eps=eps),
        out_shape=jax.ShapeDtypeStruct((Mp, H), x.dtype),
        grid=(Mp // tm,),
        in_specs=[
            pl.BlockSpec((tm, H), lambda i: (i, 0)),
            pl.BlockSpec((1, H), lambda i: (0, 0)),
            pl.BlockSpec((1, H), lambda i: (0, 0)),
        ],
        out_specs=pl.BlockSpec((tm, H), lambda i: (i, 0)),
        compiler_params=_mosaic(("parallel",), working),
    )(x, gamma.reshape(1, H), beta.reshape(1, H))
    if Mp != M:
        out = out[:M]
    return out


def _attn_kernel(qkv_ref, m_ref, o_ref, *, nH, dH):
    """Per-batch attention.

    Per-head STATIC Ref slices are loaded (only the active head's Q/K/V reach
    vregs) and each head's context is stored directly into its o_ref slice, so
    the live range is bounded to one head — no full (S, 3H) load and no
    concatenate keeping all heads alive at once.
    The 1/sqrt(dH) scale is folded into qkv_w at init.
    """
    # TODO(synk): at real RoBERTa sizes (S=512) add a head / query-tile grid
    # axis with flash-style online softmax instead of the in-kernel unroll.
    H = nH * dH
    mask = m_ref[0].astype(jnp.float32)     # (1, S) additive mask
    for h in range(nH):                     # static unroll over heads
        q = qkv_ref[0, :, h * dH:(h + 1) * dH]                    # (S, dH) bf16
        k = qkv_ref[0, :, H + h * dH:H + (h + 1) * dH]            # (S, dH) bf16
        v = qkv_ref[0, :, 2 * H + h * dH:2 * H + (h + 1) * dH]    # (S, dH) bf16
        # q @ k^T without materializing a transpose: contract the last axes.
        s = jax.lax.dot_general(q, k, (((1,), (1,)), ((), ())),
                                preferred_element_type=jnp.float32)
        s = s + mask
        s = s - jnp.max(s, axis=-1, keepdims=True)
        p = jnp.exp(s)
        # EUP reciprocal instead of a VALU divide.
        p = p * pl.reciprocal(jnp.sum(p, axis=-1, keepdims=True), approx=True)
        ctx = jnp.dot(p.astype(jnp.bfloat16), v,
                      preferred_element_type=jnp.float32)
        o_ref[0, :, h * dH:(h + 1) * dH] = ctx.astype(o_ref.dtype)


def attention(qkv, mask3, nH, dH):
    """qkv: [B, S, 3H] (fused Q|K|V, bf16); mask3: [B, 1, S] additive.
    Returns context [B, S, H]."""
    B, S, threeH = qkv.shape
    H = nH * dH
    working = 2 * (S * threeH * qkv.dtype.itemsize + S * 4
                   + S * H * qkv.dtype.itemsize) + S * S * 4 + 4 * S * dH * 4
    return pl.pallas_call(
        functools.partial(_attn_kernel, nH=nH, dH=dH),
        out_shape=jax.ShapeDtypeStruct((B, S, H), qkv.dtype),
        grid=(B,),
        in_specs=[
            pl.BlockSpec((1, S, threeH), lambda b: (b, 0, 0)),
            pl.BlockSpec((1, 1, S), lambda b: (b, 0, 0)),
        ],
        out_specs=pl.BlockSpec((1, S, H), lambda b: (b, 0, 0)),
        compiler_params=_mosaic(("parallel",), working),
    )(qkv, mask3)


# ------------------------------ model pieces -------------------------------

def init_params(key, *, vocab, max_pos, type_vocab, H, nH, dH, I, L, H_PRE=768):
    def nrm(k, shape, scale=0.02):
        return scale * jax.random.normal(k, shape, dtype=jnp.float32)

    keys = iter(jax.random.split(key, 8 + 8 * L))
    p = {
        # Embedding tables stay f32 (gather is XLA glue; LN recomputes in f32).
        "word_emb": nrm(next(keys), (vocab, H)),
        "pos_emb": nrm(next(keys), (max_pos, H)),
        "type_emb": nrm(next(keys), (type_vocab, H)),
        "emb_ln_g": jnp.ones((H,), jnp.float32),
        "emb_ln_b": jnp.zeros((H,), jnp.float32),
        "layers": [],
        # Tiny pooler / classifier head stays in plain JAX (f32).
        "pre_w": nrm(next(keys), (H, H_PRE)),
        "pre_b": jnp.zeros((H_PRE,), jnp.float32),
        "cls_w": nrm(next(keys), (H_PRE, 2)),
        "cls_b": jnp.zeros((2,), jnp.float32),
    }
    q_scale = 1.0 / math.sqrt(dH)
    for _ in range(L):
        # Q, K, V projections fused into a single [H, 3H] weight; the attention
        # scale is folded into the Q columns (and Q bias) at init.
        qkv_w = nrm(next(keys), (H, 3 * H)).at[:, :H].multiply(q_scale)
        qkv_b = jnp.zeros((3 * H,), jnp.float32).at[:H].multiply(q_scale)
        p["layers"].append({
            "qkv_w": qkv_w.astype(jnp.bfloat16),
            "qkv_b": qkv_b,
            "o_w": nrm(next(keys), (H, H)).astype(jnp.bfloat16),
            "o_b": jnp.zeros((H,), jnp.float32),
            "ln1_g": jnp.ones((H,), jnp.float32),
            "ln1_b": jnp.zeros((H,), jnp.float32),
            "i_w": nrm(next(keys), (H, I)).astype(jnp.bfloat16),
            "i_b": jnp.zeros((I,), jnp.float32),
            "d_w": nrm(next(keys), (I, H)).astype(jnp.bfloat16),
            "d_b": jnp.zeros((H,), jnp.float32),
            "ln2_g": jnp.ones((H,), jnp.float32),
            "ln2_b": jnp.zeros((H,), jnp.float32),
        })
    return p


def encoder_layer(x, mask3, lp, B, S, nH, dH):
    H = nH * dH
    # Fused QKV projection: one matmul, lane-dense [B*S, 3H] bf16 output.
    qkv = linear(x, lp["qkv_w"], lp["qkv_b"])
    # [B*S, 3H] -> [B, S, 3H] is a free row-major reshape (no transpose).
    ctx = attention(qkv.reshape(B, S, 3 * H), mask3, nH, dH).reshape(B * S, H)
    # Fused output projection + residual + LayerNorm.
    x = linear_residual_layernorm(ctx, lp["o_w"], lp["o_b"], x,
                                  lp["ln1_g"], lp["ln1_b"])
    # FFN: up-projection with fused GELU (bf16 out), then fused down-proj +
    # residual + LN.
    ffn = linear(x, lp["i_w"], lp["i_b"], activation="gelu")
    x = linear_residual_layernorm(ffn, lp["d_w"], lp["d_b"], x,
                                  lp["ln2_g"], lp["ln2_b"])
    return x


def roberta_class_forward(params, input_ids, attention_mask, token_type_ids,
                          *, nH, dH):
    B, S = input_ids.shape
    H = nH * dH

    # --- embeddings (gather is glue) ---
    # RoBERTa position ids: count only non-pad (attended) tokens, offset by the
    # padding index (1), matching create_position_ids_from_input_ids.
    am_i = attention_mask.astype(jnp.int32)
    pos_ids = jnp.cumsum(am_i, axis=1) * am_i + 1
    emb = (jnp.take(params["word_emb"], input_ids, axis=0)
           + jnp.take(params["pos_emb"], pos_ids, axis=0)
           + jnp.take(params["type_emb"], token_type_ids, axis=0))
    # Inter-kernel activations are bf16; LN statistics are computed in f32.
    x = emb.reshape(B * S, H).astype(jnp.bfloat16)
    x = layernorm(x, params["emb_ln_g"], params["emb_ln_b"])

    # additive mask: 0 where attended, -10000 where masked; [B, 1, S]
    mask3 = ((1.0 - attention_mask.astype(jnp.float32)) * -10000.0
             ).reshape(B, 1, S)

    for lp in params["layers"]:
        x = encoder_layer(x, mask3, lp, B, S, nH, dH)

    hidden_state = x.reshape(B, S, H)
    pooler_in = hidden_state[:, 0].astype(jnp.float32)     # [B, H] (CLS token)
    # Pooler (M = B rows) and 2-wide classifier head are tiny and lane-sparse:
    # keep them in plain JAX rather than paying pallas_call overhead for
    # masked partial stores.
    pooler = jnp.maximum(pooler_in @ params["pre_w"] + params["pre_b"], 0.0)
    # TODO(synk): dropout(p=0.1) is identity at inference/eval time.
    # TODO(synk): regression branch (self.regressor) not emitted; task is
    # classification in the reference config.
    logits = pooler @ params["cls_w"] + params["cls_b"]     # classification head
    return logits                                           # [B, 2]


# ---------------------------------- main -----------------------------------

if __name__ == "__main__":
    B, S = 2, 8            # batch, sequence length
    H, nH, dH = 32, 2, 16  # hidden size, heads, head dim
    I = 64                 # FFN intermediate
    L = 2                  # encoder layers
    VOCAB, MAX_POS, TYPE_VOCAB = 100, 40, 2

    key = jax.random.PRNGKey(0)
    k_params, k_ids = jax.random.split(key)

    params = init_params(k_params, vocab=VOCAB, max_pos=MAX_POS,
                         type_vocab=TYPE_VOCAB, H=H, nH=nH, dH=dH, I=I, L=L)

    input_ids = jax.random.randint(k_ids, (B, S), 0, VOCAB, dtype=jnp.int32)
    attention_mask = jnp.ones((B, S), dtype=jnp.int32).at[1, -2:].set(0)
    token_type_ids = jnp.zeros((B, S), dtype=jnp.int32)

    logits = roberta_class_forward(params, input_ids, attention_mask,
                                   token_type_ids, nH=nH, dH=dH)
    logits = jax.block_until_ready(logits)
    assert logits.shape == (B, 2) and logits.dtype == jnp.float32
    print("KERNEL_OK")
</pallas_src>

<mosaic_0001>
module attributes {stable_mosaic.version = 11 : i64} {
  func.func @_ln_kernel(%arg0: i32, %arg1: memref<16x32xbf16, #tpu.memory_space<vmem>>, %arg2: memref<1x32xf32, #tpu.memory_space<vmem>>, %arg3: memref<1x32xf32, #tpu.memory_space<vmem>>, %arg4: memref<16x32xbf16, #tpu.memory_space<vmem>>) attributes {dimension_semantics = [#tpu.dimension_semantics<parallel>], iteration_bounds = array<i64: 1>, scalar_prefetch = 0 : i64, scratch_operands = 0 : i64, tpu.core_type = #tpu.core_type<tc>, window_params = [{transform_indices = @transform_0, window_bounds = array<i64: 16, 32>}, {pipeline_mode = #tpu.pipeline_mode<synchronous>, transform_indices = @transform_1, window_bounds = array<i64: 1, 32>}, {pipeline_mode = #tpu.pipeline_mode<synchronous>, transform_indices = @transform_2, window_bounds = array<i64: 1, 32>}, {transform_indices = @transform_3, window_bounds = array<i64: 16, 32>}]} {
    %c0 = arith.constant 0 : index
    %c0_0 = arith.constant 0 : index
    %0 = vector.load %arg1[%c0, %c0_0] : memref<16x32xbf16, #tpu.memory_space<vmem>>, vector<16x32xbf16>
    %1 = arith.extf %0 : vector<16x32xbf16> to vector<16x32xf32>
    %cst = arith.constant dense<0.000000e+00> : vector<16xf32>
    %2 = vector.multi_reduction <add>, %1, %cst [1] : vector<16x32xf32> to vector<16xf32>
    %3 = vector.shape_cast %2 : vector<16xf32> to vector<16x1xf32>
    %cst_1 = arith.constant 3.200000e+01 : f32
    %4 = vector.broadcast %cst_1 : f32 to vector<16x1xf32>
    %5 = arith.divf %3, %4 : vector<16x1xf32>
    %6 = vector.broadcast %5 : vector<16x1xf32> to vector<16x32xf32>
    %7 = arith.subf %1, %6 : vector<16x32xf32>
    %8 = arith.mulf %7, %7 : vector<16x32xf32>
    %cst_2 = arith.constant dense<0.000000e+00> : vector<16xf32>
    %9 = vector.multi_reduction <add>, %8, %cst_2 [1] : vector<16x32xf32> to vector<16xf32>
    %10 = vector.shape_cast %9 : vector<16xf32> to vector<16x1xf32>
    %cst_3 = arith.constant 3.200000e+01 : f32
    %11 = vector.broadcast %cst_3 : f32 to vector<16x1xf32>
    %12 = arith.divf %10, %11 : vector<16x1xf32>
    %13 = vector.broadcast %5 : vector<16x1xf32> to vector<16x32xf32>
    %14 = arith.subf %1, %13 : vector<16x32xf32>
    %cst_4 = arith.constant 9.99999974E-6 : f32
    %15 = vector.broadcast %cst_4 : f32 to vector<16x1xf32>
    %16 = arith.addf %12, %15 : vector<16x1xf32>
    %17 = math.rsqrt %16 : vector<16x1xf32>
    %18 = vector.broadcast %17 : vector<16x1xf32> to vector<16x32xf32>
    %19 = arith.mulf %14, %18 : vector<16x32xf32>
    %c0_5 = arith.constant 0 : index
    %c0_6 = arith.constant 0 : index
    %20 = vector.load %arg2[%c0_5, %c0_6] : memref<1x32xf32, #tpu.memory_space<vmem>>, vector<1x32xf32>
    %21 = vector.broadcast %20 : vector<1x32xf32> to vector<16x32xf32>
    %22 = arith.mulf %19, %21 : vector<16x32xf32>
    %c0_7 = arith.constant 0 : index
    %c0_8 = arith.constant 0 : index
    %23 = vector.load %arg3[%c0_7, %c0_8] : memref<1x32xf32, #tpu.memory_space<vmem>>, vector<1x32xf32>
    %24 = vector.broadcast %23 : vector<1x32xf32> to vector<16x32xf32>
    %25 = arith.addf %22, %24 : vector<16x32xf32>
    %26 = arith.truncf %25 : vector<16x32xf32> to vector<16x32xbf16>
    %c0_9 = arith.constant 0 : index
    %c0_10 = arith.constant 0 : index
    %27 = vector.load %arg4[%c0_9, %c0_10] : memref<16x32xbf16, #tpu.memory_space<vmem>>, vector<16x32xbf16>
    tpu.vector_store %arg4[%c0_9, %c0_10], %26 {strides = array<i32>} : memref<16x32xbf16, #tpu.memory_space<vmem>>, vector<16x32xbf16>,
    return
  }
  func.func @transform_0(%arg0: i32) -> (i32, i32) {
    %c0_i32 = arith.constant 0 : i32
    %c0_i32_0 = arith.constant 0 : i32
    return %arg0, %c0_i32 : i32, i32
  }
  func.func @transform_1(%arg0: i32) -> (i32, i32) {
    %c0_i32 = arith.constant 0 : i32
    %c0_i32_0 = arith.constant 0 : i32
    %c0_i32_1 = arith.constant 0 : i32
    return %c0_i32, %c0_i32_0 : i32, i32
  }
  func.func @transform_2(%arg0: i32) -> (i32, i32) {
    %c0_i32 = arith.constant 0 : i32
    %c0_i32_0 = arith.constant 0 : i32
    %c0_i32_1 = arith.constant 0 : i32
    return %c0_i32, %c0_i32_0 : i32, i32
  }
  func.func @transform_3(%arg0: i32) -> (i32, i32) {
    %c0_i32 = arith.constant 0 : i32
    %c0_i32_0 = arith.constant 0 : i32
    return %arg0, %c0_i32 : i32, i32
  }
}

</mosaic_0001>

<bundles_post_ra>
// kernel: tpu_custom_call.1
= control target key start
LH: loop header
LB: loop body
LE: loop exit
PB: predicated region body
PF: predicated region fallthrough
CT: control target
= control target key end

     0   :  { %8 = vsyncpa [#allocation3], 0  ;;  %s282_s0 = inlined_call_operand.hbm [shape: bf16[16,32], index: 0, kind: input, shape index: {}]   ;;  %s283_s1 = inlined_call_operand.hbm [shape: f32[1,32], index: 1, kind: input, shape index: {}]   ;;  %s284_s2 = inlined_call_operand.vmem [shape: f32[1,32], index: 2, kind: input, shape index: {}]   ;;  %s285_s3 = inlined_call_operand.hbm [shape: bf16[16,32], index: 3, kind: output, shape index: {}]  }
   0x1   :  { %9 = vsyncpa [#allocation6], 0 }
   0x2   :  { %10 = vsyncpa [#allocation4], 0  ;;  %s15_s14 = sshll.u32 %s282_s0, 4  ;;  %s234_s15 = smov [#allocation2]   ;;  %s16_s14 = int_to_ptr.hbm [resolvable:$true] %s15_s14 }
   0x3   :  { %s17_s16 = sshll.u32 %s234_s15, 4  ;;  %s29_s19 = sshll.u32 %s283_s1, 4  ;;  %s18_s16 = int_to_ptr.vmem [resolvable:$true] %s17_s16  ;;  %s30_s19 = int_to_ptr.hbm [resolvable:$true] %s29_s19 }
   0x4   :  { %s235_s20 = smov 64   ;;  %s236_s21 = smov 4  }
   0x5   :  { %23 = dma.hbm_to_vmem [thread:$0]  %s16_s14, 128, %s18_s16, [#allocation3], %s235_s20, %s235_s20, %s236_s21  }
   0x6   :  { %s237_s22 = smov [#allocation5]  }
   0x7   :  { %s31_s23 = sshll.u32 %s237_s22, 4  ;;  %s32_s23 = int_to_ptr.vmem [resolvable:$true] %s31_s23 }
   0x8   :  { %34 = dma.hbm_to_vmem [thread:$0]  %s30_s19, 16, %s32_s23, [#allocation6]  }
   0x9   :  { %228 = dma.done.wait [#allocation3], 128  }
   0xa   :  { %229 = vsyncadd [#allocation3], 4294967168 }
   0xb   :  { %230 = dma.done.wait [#allocation6], 16  }
   0xc   :  { %231 = vsyncadd [#allocation6], 4294967280  ;;  %v139_v0 = vld [vmem:[#allocation2] sm:$0xff]   ;;  %vm49_vm0 = vcmask 261120   ;;  %v238_v5 = vmov 32.0   ;;  %vm115_vm7 = vcmask 257024  }
   0xd   :  { %v140_v1 = vunpack.c.l.bf16 %v139_v0  ;;  %v141_v3 = vunpack.c.h.bf16 %v139_v0  ;;  %150 = vrcp.f32 %v238_v5  ;;  %v148_v36 = vld [vmem:[#allocation5] ss:$0 sm:$0xff]  ;;  %v149_v40 = vld [vmem:[%s284_s2] ss:$0 sm:$0xff]  ;;  %s239_s24 = smov [#allocation7]   ;;  %s124_s2 = sshll.u32 %s285_s3, 4  ;;  %s125_s2 = int_to_ptr.hbm [resolvable:$true] %s124_s2 }
   0xe   :  { %s122_s25 = sshll.u32 %s239_s24, 4  ;;  %s123_s25 = int_to_ptr.vmem [resolvable:$true] %s122_s25 }
   0xf   :  { %v50_v2 = vsel %vm49_vm0, %v140_v1, 0.0  ;;  %v53_v4 = vsel %vm49_vm0, %v141_v3, 0.0 }
  0x10   :  { %51 = vadd.xlane.f32.xlu0 %v50_v2 }
  0x13   :  { %v151_v6 = vpop.eup %150 }
  0x14   :  { %v57_v7 = vmul.f32 32.0, %v151_v6  ;;  %vm61_vm1 = vweird.f32 %v151_v6 }
  0x16   :  { %v58_v8 = vsub.f32 1.0, %v57_v7 }
  0x18   :  { %54 = vadd.xlane.f32.xlu0 %v53_v4  ;;  %v59_v9 = vmul.f32 %v151_v6, %v58_v8 }
  0x1a   :  { %v60_v10 = vadd.f32 %v151_v6, %v59_v9 }
  0x1c   :  { %v62_v11 = vsel %vm61_vm1, %v151_v6, %v60_v10 }
  0x83   :  { %v52_v12 = vpop.xlane.xlu0 %51 }
  0x84   :  { %v63_v13 = vmul.f32 %v62_v11, %v52_v12 }
  0x86   :  { %v65_v14 = vsub.f32 %v140_v1, %v63_v13 }
  0x88   :  { %v67_v15 = vmul.f32 %v65_v14, %v65_v14 }
  0x8a   :  { %v69_v16 = vsel %vm49_vm0, %v67_v15, 0.0 }
  0x8b   :  { %70 = vadd.xlane.f32.xlu1 %v69_v16  ;;  %v55_v17 = vpop.xlane.xlu0 %54 }
  0x8c   :  { %v64_v18 = vmul.f32 %v62_v11, %v55_v17 }
  0x8e   :  { %v66_v19 = vsub.f32 %v141_v3, %v64_v18 }
  0x90   :  { %v68_v20 = vmul.f32 %v66_v19, %v66_v19 }
  0x92   :  { %v72_v21 = vsel %vm49_vm0, %v68_v20, 0.0 }
  0x93   :  { %73 = vadd.xlane.f32.xlu1 %v72_v21 }
  0xfe   :  { %v71_v22 = vpop.xlane.xlu1 %70 }
  0xff   :  { %v75_v23 = vmul.f32 %v71_v22, %v62_v11 }
 0x101   :  { %v77_v24 = vadd.f32 1e-05, %v75_v23 }
 0x103   :  { %152 = vrsqrt.f32 %v77_v24  ;;  %vm85_vm3 = vweird.f32 %v77_v24 }
 0x106   :  { %v74_v25 = vpop.xlane.xlu1 %73 }
 0x107   :  { %v76_v26 = vmul.f32 %v74_v25, %v62_v11 }
 0x109   :  { %v153_v27 = vpop.eup %152  ;;  %v78_v28 = vadd.f32 1e-05, %v76_v26 }
 0x10a   :  { %v80_v29 = vmul.f32 %v153_v27, %v77_v24  ;;  %vm86_vm2 = vweird.f32 %v153_v27 }
 0x10b   :  { %154 = vrsqrt.f32 %v78_v28  ;;  %vm87_vm4 = vmor %vm85_vm3, %vm86_vm2  ;;  %vm95_vm6 = vweird.f32 %v78_v28 }
 0x10c   :  { %v81_v30 = vmul.f32 %v153_v27, %v80_v29 }
 0x10e   :  { %v82_v31 = vmul.f32 0.5, %v81_v30 }
 0x110   :  { %v83_v32 = vsub.f32 1.5, %v82_v31 }
 0x111   :  { %v155_v33 = vpop.eup %154 }
 0x112   :  { %v84_v34 = vmul.f32 %v153_v27, %v83_v32  ;;  %v90_v35 = vmul.f32 %v155_v33, %v78_v28  ;;  %vm96_vm5 = vweird.f32 %v155_v33 }
 0x113   :  { %vm97_vm8 = vmor %vm95_vm6, %vm96_vm5 }
 0x114   :  { %v88_v37 = vsel %vm87_vm4, %v153_v27, %v84_v34  ;;  %v91_v38 = vmul.f32 %v155_v33, %v90_v35 }
 0x115   :  { %v99_v39 = vmul.f32 %v88_v37, %v65_v14 }
 0x116   :  { %v92_v41 = vmul.f32 0.5, %v91_v38 }
 0x117   :  { %v105_v42 = vmul.f32 %v148_v36, %v99_v39 }
 0x118   :  { %v93_v43 = vsub.f32 1.5, %v92_v41 }
 0x119   :  { %v111_v44 = vadd.f32 %v149_v40, %v105_v42 }
 0x11a   :  { %v94_v45 = vmul.f32 %v155_v33, %v93_v43 }
 0x11b   :  { %v113_v46 = vpack.c.bf16 %v111_v44, %v111_v44 }
 0x11c   :  { %v98_v47 = vsel %vm97_vm8, %v155_v33, %v94_v45 }
 0x11d   :  { %v100_v48 = vmul.f32 %v98_v47, %v66_v19  ;;  %116 = vst.msk [vmem:[#allocation7] sm:$0xf] %vm115_vm7, %v113_v46 }
 0x11f   :  { %v106_v49 = vmul.f32 %v148_v36, %v100_v48 }
 0x121   :  { %v112_v50 = vadd.f32 %v149_v40, %v106_v49 }
 0x123   :  { %v114_v51 = vpack.c.bf16 %v112_v50, %v112_v50 }
 0x125   :  { %117 = vst.msk [vmem:[#allocation7 + $0x4] sm:$0xf] %vm115_vm7, %v114_v51 }
 0x126   :  { %130 = dma.vmem_to_hbm [thread:$0]  %s123_s25, 128, %s125_s2, [#allocation4], %s235_s20, %s235_s20, %s236_s21  }
 0x127   :  { %232 = dma.done.wait [#allocation4], 128  }
 0x128   :  { %233 = vsyncadd [#allocation4], 4294967168 }
 0x129   :  { %135 = vsyncpa [#allocation3], 1 }
 0x12a   :  { %136 = vsyncpa [#allocation6], 1 }
 0x12b   :  { %137 = vsyncpa [#allocation4], 1 }

</bundles_post_ra>
